<compile_context>
chip_gen: v7x
topology: tpu7x:2x2x1
jax: 0.10.0
libtpu: 0.0.40
codegen_flags: <defaults>
</compile_context>

<pallas_src>
import functools

import jax
import jax.numpy as jnp
import numpy as np
from jax import lax
from jax.experimental import pallas as pl
from jax.experimental.pallas import tpu as pltpu

EPS = 1e-12
MOMENTUM = 0.1
_LANE = 128


def _round_up(x, m):
    return (x + m - 1) // m * m


def _vmem_capacity_bytes():
    try:
        cap = getattr(pltpu.get_tpu_info(), "vmem_capacity_bytes", None)
        if cap:
            return int(cap)
    except Exception:
        pass
    return 64 * 1024 * 1024  # conservative (v7x per-TensorCore)


def _pick_tile_h(batch, chan, h, vmem_budget):
    """Largest lane tile whose true working set (double-buffered x/y blocks,
    params, and in-kernel (C, T) temporaries) fits the per-generation budget."""
    n = batch * chan
    # f32 elements per lane-column:
    #   x in:  2 planes * 2 bufs * N        = 4N
    #   y out: 2 planes * 2 bufs * N        = 4N
    #   params: 4 planes * 2 bufs * C       = 8C
    #   kernel (C,T) temporaries (partials, coeffs, slices): ~16C
    #   stats / running buffers: small constant
    bytes_per_col = 4 * (8 * n + 24 * chan + 64)
    tile = _LANE
    for t in (1024, 512, 256):
        if t * bytes_per_col <= vmem_budget:
            tile = t
            break
    # Don't make the block wider than the (lane-rounded) array.
    tile = min(tile, _round_up(max(h, _LANE), _LANE))
    # v7x has 2 TensorCores; prefer a parallel H grid of length >= 2 when H
    # allows it, without dropping below the ~roofline-friendly 256 tile.
    while tile > 256 and pl.cdiv(h, tile) < 2:
        tile //= 2
    return tile


def _spectral_rescale_kernel(xr_ref, xi_ref, mr_ref, mi_ref, br_ref, bi_ref,
                             rmr_ref, rmi_ref, rsd_ref,
                             yr_ref, yi_ref, omr_ref, omi_ref, osd_ref,
                             *, batch, chan):
    # xr/xi/yr/yi: (B, C, T); mags/bias: (C, T); buffers & stats: (1, T).
    n = batch * chan
    ct_shape = mr_ref.shape  # (C, T)
    zero_ct = jnp.zeros(ct_shape, jnp.float32)

    # --- pass 1: streaming sum over batch row-blocks -> per-column mean ------
    def p1(bb, carry):
        pr, pi = carry
        return pr + xr_ref[bb], pi + xi_ref[bb]

    part_r, part_i = lax.fori_loop(0, batch, p1, (zero_ct, zero_ct),
                                   unroll=True)
    inv_n = 1.0 / n
    mean_r = jnp.sum(part_r, axis=0, keepdims=True) * inv_n   # (1, T)
    mean_i = jnp.sum(part_i, axis=0, keepdims=True) * inv_n

    # Broadcasts hoisted once per tile (JAX does not CSE broadcast_in_dim).
    mean_r_c = jnp.broadcast_to(mean_r, ct_shape)
    mean_i_c = jnp.broadcast_to(mean_i, ct_shape)

    # --- pass 2: stable two-pass unbiased variance of |x - mean| -------------
    # (re-reads VMEM only; no extra HBM traffic)
    def p2(bb, acc):
        dr = xr_ref[bb] - mean_r_c
        di = xi_ref[bb] - mean_i_c
        return acc + (dr * dr + di * di)

    sq = lax.fori_loop(0, batch, p2, zero_ct, unroll=True)
    # NOTE: unbiased variance is undefined (NaN in torch) when B*C == 1.
    var = jnp.sum(sq, axis=0, keepdims=True) * (1.0 / (n - 1))
    std = jnp.sqrt(var)
    inv = pl.reciprocal(EPS + std)   # exact; only (1, T) elements

    # --- fused running-buffer (momentum) update (in place via aliasing) ------
    omr_ref[...] = (1.0 - MOMENTUM) * rmr_ref[...] + MOMENTUM * mean_r
    omi_ref[...] = (1.0 - MOMENTUM) * rmi_ref[...] + MOMENTUM * mean_i
    osd_ref[...] = (1.0 - MOMENTUM) * rsd_ref[...] + MOMENTUM * std

    # --- fold normalize + complex affine into per-column coefficients --------
    #   y = (x - mean) * inv * mags + bias  ==  x * a + c   (complex a, c)
    inv_c = jnp.broadcast_to(inv, ct_shape)
    mr = mr_ref[...]
    mi = mi_ref[...]
    a_r = mr * inv_c
    a_i = mi * inv_c
    c_r = br_ref[...] - (mean_r_c * a_r - mean_i_c * a_i)
    c_i = bi_ref[...] - (mean_r_c * a_i + mean_i_c * a_r)

    # --- pass 3: y = x * a + c, one batch row-block at a time -----------------
    def p3(bb, carry):
        xr = xr_ref[bb]
        xi = xi_ref[bb]
        yr_ref[bb] = xr * a_r - xi * a_i + c_r
        yi_ref[bb] = xr * a_i + xi * a_r + c_i
        return carry

    lax.fori_loop(0, batch, p3, 0, unroll=True)


def spectral_rescale_forward(x_re, x_im, mags_re, mags_im, bias_re, bias_im,
                             mean_buf_re, mean_buf_im, std_buf):
    """Training-mode forward of SpectralRescale.

    x_re/x_im:     (B, C, H) float32 (real/imag planes of the complex input)
    mags_*/bias_*: (1, C, H) float32
    mean_buf_*:    (1, 1, H) float32   (running mean, real/imag planes)
    std_buf:       (1, 1, H) float32   (running std)

    Returns (y_re, y_im, new_mean_re, new_mean_im, new_std).
    """
    B, C, H = x_re.shape
    assert B * C > 1, "unbiased std is undefined (NaN in torch) for B*C == 1"

    cap = _vmem_capacity_bytes()
    vmem_limit = int(max(32 * 1024 * 1024,
                         min(cap - 16 * 1024 * 1024, 64 * 1024 * 1024)))
    tile_h = _pick_tile_h(B, C, H, min(cap // 2, 56 * 1024 * 1024))

    # Cheap (metadata-only) reshapes of the small tensors; x/y are untouched.
    mr2 = mags_re.reshape(C, H)
    mi2 = mags_im.reshape(C, H)
    br2 = bias_re.reshape(C, H)
    bi2 = bias_im.reshape(C, H)
    rmr = mean_buf_re.reshape(1, H)
    rmi = mean_buf_im.reshape(1, H)
    rsd = std_buf.reshape(1, H)

    grid = (pl.cdiv(H, tile_h),)   # ragged final tile handled by partial-block DMA
    x_spec = pl.BlockSpec((B, C, tile_h), lambda h: (0, 0, h))
    p_spec = pl.BlockSpec((C, tile_h), lambda h: (0, h))
    s_spec = pl.BlockSpec((1, tile_h), lambda h: (0, h))

    out_shapes = (
        jax.ShapeDtypeStruct((B, C, H), jnp.float32),   # y real
        jax.ShapeDtypeStruct((B, C, H), jnp.float32),   # y imag
        jax.ShapeDtypeStruct((1, H), jnp.float32),      # new running mean real
        jax.ShapeDtypeStruct((1, H), jnp.float32),      # new running mean imag
        jax.ShapeDtypeStruct((1, H), jnp.float32),      # new running std
    )

    yr, yi, nmr, nmi, nsd = pl.pallas_call(
        functools.partial(_spectral_rescale_kernel, batch=B, chan=C),
        out_shape=out_shapes,
        grid=grid,
        in_specs=[x_spec, x_spec, p_spec, p_spec, p_spec, p_spec,
                  s_spec, s_spec, s_spec],
        out_specs=(x_spec, x_spec, s_spec, s_spec, s_spec),
        input_output_aliases={6: 2, 7: 3, 8: 4},   # running buffers in place
        compiler_params=pltpu.CompilerParams(
            dimension_semantics=("parallel",),
            vmem_limit_bytes=vmem_limit),
    )(x_re, x_im, mr2, mi2, br2, bi2, rmr, rmi, rsd)

    return (yr, yi,
            nmr.reshape(1, 1, H), nmi.reshape(1, 1, H), nsd.reshape(1, 1, H))


def _reference_forward(x_re, x_im, mags_re, mags_im, bias_re, bias_im,
                       mean_buf_re, mean_buf_im, std_buf):
    # Pure-JAX reference of the torch training forward (complex on real planes).
    N = x_re.shape[0] * x_re.shape[1]
    mean_r = jnp.mean(x_re, axis=(0, 1), keepdims=True)
    mean_i = jnp.mean(x_im, axis=(0, 1), keepdims=True)
    dr = x_re - mean_r
    di = x_im - mean_i
    var = jnp.sum(dr * dr + di * di, axis=(0, 1), keepdims=True) / (N - 1)
    std = jnp.sqrt(var)
    inv = 1.0 / (EPS + std)
    yr = dr * inv
    yi = di * inv
    out_r = yr * mags_re - yi * mags_im + bias_re
    out_i = yr * mags_im + yi * mags_re + bias_im
    nmr = (1.0 - MOMENTUM) * mean_buf_re + MOMENTUM * mean_r
    nmi = (1.0 - MOMENTUM) * mean_buf_im + MOMENTUM * mean_i
    nsd = (1.0 - MOMENTUM) * std_buf + MOMENTUM * std
    return out_r, out_i, nmr, nmi, nsd


if __name__ == "__main__":
    B, C, H = 2, 4, 16

    key = jax.random.PRNGKey(0)
    k1, k2, k3, k4, k5, k6 = jax.random.split(key, 6)
    x_re = jax.random.normal(k1, (B, C, H), dtype=jnp.float32)
    x_im = jax.random.normal(k2, (B, C, H), dtype=jnp.float32)

    # Non-trivial affine params / buffers (a trained module state) so the
    # per-channel broadcast path is actually exercised.
    mags_re = 1.0 + 0.1 * jax.random.normal(k3, (1, C, H), dtype=jnp.float32)
    mags_im = 0.1 * jax.random.normal(k4, (1, C, H), dtype=jnp.float32)
    bias_re = 0.1 * jax.random.normal(k5, (1, C, H), dtype=jnp.float32)
    bias_im = 0.1 * jax.random.normal(k6, (1, C, H), dtype=jnp.float32)
    mean_buf_re = jnp.zeros((1, 1, H), dtype=jnp.float32)
    mean_buf_im = jnp.zeros((1, 1, H), dtype=jnp.float32)
    std_buf = jnp.ones((1, 1, H), dtype=jnp.float32)

    # Reference first (running buffers are donated/aliased by the kernel call).
    ref = _reference_forward(x_re, x_im, mags_re, mags_im, bias_re, bias_im,
                             mean_buf_re, mean_buf_im, std_buf)
    ref = jax.block_until_ready(ref)
    ref_r, ref_i, ref_mr, ref_mi, ref_sd = ref

    outs = spectral_rescale_forward(x_re, x_im, mags_re, mags_im,
                                    bias_re, bias_im,
                                    mean_buf_re, mean_buf_im, std_buf)
    outs = jax.block_until_ready(outs)
    y_re, y_im, nm_r, nm_i, n_sd = outs

    np.testing.assert_allclose(np.asarray(y_re), np.asarray(ref_r), rtol=1e-5, atol=1e-5)
    np.testing.assert_allclose(np.asarray(y_im), np.asarray(ref_i), rtol=1e-5, atol=1e-5)
    np.testing.assert_allclose(np.asarray(nm_r), np.asarray(ref_mr), rtol=1e-5, atol=1e-5)
    np.testing.assert_allclose(np.asarray(nm_i), np.asarray(ref_mi), rtol=1e-5, atol=1e-5)
    np.testing.assert_allclose(np.asarray(n_sd), np.asarray(ref_sd), rtol=1e-5, atol=1e-5)

    print("KERNEL_OK")
</pallas_src>

<mosaic_0001>
module attributes {stable_mosaic.version = 11 : i64} {
  func.func @_spectral_rescale_kernel(%arg0: i32, %arg1: memref<2x4x128xf32, #tpu.memory_space<vmem>>, %arg2: memref<2x4x128xf32, #tpu.memory_space<vmem>>, %arg3: memref<4x128xf32, #tpu.memory_space<vmem>>, %arg4: memref<4x128xf32, #tpu.memory_space<vmem>>, %arg5: memref<4x128xf32, #tpu.memory_space<vmem>>, %arg6: memref<4x128xf32, #tpu.memory_space<vmem>>, %arg7: memref<1x128xf32, #tpu.memory_space<vmem>>, %arg8: memref<1x128xf32, #tpu.memory_space<vmem>>, %arg9: memref<1x128xf32, #tpu.memory_space<vmem>>, %arg10: memref<2x4x128xf32, #tpu.memory_space<vmem>>, %arg11: memref<2x4x128xf32, #tpu.memory_space<vmem>>, %arg12: memref<1x128xf32, #tpu.memory_space<vmem>>, %arg13: memref<1x128xf32, #tpu.memory_space<vmem>>, %arg14: memref<1x128xf32, #tpu.memory_space<vmem>>) attributes {dimension_semantics = [#tpu.dimension_semantics<parallel>], iteration_bounds = array<i64: 1>, scalar_prefetch = 0 : i64, scratch_operands = 0 : i64, tpu.core_type = #tpu.core_type<tc>, window_params = [{transform_indices = @transform_0, window_bounds = array<i64: 2, 4, 128>}, {transform_indices = @transform_1, window_bounds = array<i64: 2, 4, 128>}, {transform_indices = @transform_2, window_bounds = array<i64: 4, 128>}, {transform_indices = @transform_3, window_bounds = array<i64: 4, 128>}, {transform_indices = @transform_4, window_bounds = array<i64: 4, 128>}, {transform_indices = @transform_5, window_bounds = array<i64: 4, 128>}, {transform_indices = @transform_6, window_bounds = array<i64: 1, 128>}, {transform_indices = @transform_7, window_bounds = array<i64: 1, 128>}, {transform_indices = @transform_8, window_bounds = array<i64: 1, 128>}, {transform_indices = @transform_9, window_bounds = array<i64: 2, 4, 128>}, {transform_indices = @transform_10, window_bounds = array<i64: 2, 4, 128>}, {transform_indices = @transform_11, window_bounds = array<i64: 1, 128>}, {transform_indices = @transform_12, window_bounds = array<i64: 1, 128>}, {transform_indices = @transform_13, window_bounds = array<i64: 1, 128>}]} {
    %cst = arith.constant 0.000000e+00 : f32
    %0 = vector.broadcast %cst : f32 to vector<4x128xf32>
    %c0_i32 = arith.constant 0 : i32
    %1 = arith.index_cast %c0_i32 : i32 to index
    %c0 = arith.constant 0 : index
    %c0_0 = arith.constant 0 : index
    %2 = vector.load %arg1[%1, %c0, %c0_0] : memref<2x4x128xf32, #tpu.memory_space<vmem>>, vector<1x4x128xf32>
    %3 = vector.shape_cast %2 : vector<1x4x128xf32> to vector<4x128xf32>
    %4 = arith.addf %0, %3 : vector<4x128xf32>
    %5 = arith.index_cast %c0_i32 : i32 to index
    %c0_1 = arith.constant 0 : index
    %c0_2 = arith.constant 0 : index
    %6 = vector.load %arg2[%5, %c0_1, %c0_2] : memref<2x4x128xf32, #tpu.memory_space<vmem>>, vector<1x4x128xf32>
    %7 = vector.shape_cast %6 : vector<1x4x128xf32> to vector<4x128xf32>
    %8 = arith.addf %0, %7 : vector<4x128xf32>
    %c1_i32 = arith.constant 1 : i32
    %9 = arith.index_cast %c1_i32 : i32 to index
    %c0_3 = arith.constant 0 : index
    %c0_4 = arith.constant 0 : index
    %10 = vector.load %arg1[%9, %c0_3, %c0_4] : memref<2x4x128xf32, #tpu.memory_space<vmem>>, vector<1x4x128xf32>
    %11 = vector.shape_cast %10 : vector<1x4x128xf32> to vector<4x128xf32>
    %12 = arith.addf %4, %11 : vector<4x128xf32>
    %13 = arith.index_cast %c1_i32 : i32 to index
    %c0_5 = arith.constant 0 : index
    %c0_6 = arith.constant 0 : index
    %14 = vector.load %arg2[%13, %c0_5, %c0_6] : memref<2x4x128xf32, #tpu.memory_space<vmem>>, vector<1x4x128xf32>
    %15 = vector.shape_cast %14 : vector<1x4x128xf32> to vector<4x128xf32>
    %16 = arith.addf %8, %15 : vector<4x128xf32>
    %c2_i32 = arith.constant 2 : i32
    %cst_7 = arith.constant dense<0.000000e+00> : vector<128xf32>
    %17 = vector.multi_reduction <add>, %12, %cst_7 [0] : vector<4x128xf32> to vector<128xf32>
    %18 = vector.shape_cast %17 : vector<128xf32> to vector<1x128xf32>
    %cst_8 = arith.constant 1.250000e-01 : f32
    %19 = vector.broadcast %cst_8 : f32 to vector<1x128xf32>
    %20 = arith.mulf %18, %19 : vector<1x128xf32>
    %cst_9 = arith.constant dense<0.000000e+00> : vector<128xf32>
    %21 = vector.multi_reduction <add>, %16, %cst_9 [0] : vector<4x128xf32> to vector<128xf32>
    %22 = vector.shape_cast %21 : vector<128xf32> to vector<1x128xf32>
    %cst_10 = arith.constant 1.250000e-01 : f32
    %23 = vector.broadcast %cst_10 : f32 to vector<1x128xf32>
    %24 = arith.mulf %22, %23 : vector<1x128xf32>
    %25 = vector.shape_cast %20 : vector<1x128xf32> to vector<1x128xf32>
    %26 = vector.broadcast %25 : vector<1x128xf32> to vector<4x128xf32>
    %27 = vector.shape_cast %24 : vector<1x128xf32> to vector<1x128xf32>
    %28 = vector.broadcast %27 : vector<1x128xf32> to vector<4x128xf32>
    %c0_i32_11 = arith.constant 0 : i32
    %29 = arith.index_cast %c0_i32_11 : i32 to index
    %c0_12 = arith.constant 0 : index
    %c0_13 = arith.constant 0 : index
    %30 = vector.load %arg1[%29, %c0_12, %c0_13] : memref<2x4x128xf32, #tpu.memory_space<vmem>>, vector<1x4x128xf32>
    %31 = vector.shape_cast %30 : vector<1x4x128xf32> to vector<4x128xf32>
    %32 = arith.subf %31, %26 : vector<4x128xf32>
    %33 = arith.index_cast %c0_i32_11 : i32 to index
    %c0_14 = arith.constant 0 : index
    %c0_15 = arith.constant 0 : index
    %34 = vector.load %arg2[%33, %c0_14, %c0_15] : memref<2x4x128xf32, #tpu.memory_space<vmem>>, vector<1x4x128xf32>
    %35 = vector.shape_cast %34 : vector<1x4x128xf32> to vector<4x128xf32>
    %36 = arith.subf %35, %28 : vector<4x128xf32>
    %37 = arith.mulf %32, %32 : vector<4x128xf32>
    %38 = arith.mulf %36, %36 : vector<4x128xf32>
    %39 = arith.addf %37, %38 : vector<4x128xf32>
    %40 = arith.addf %0, %39 : vector<4x128xf32>
    %c1_i32_16 = arith.constant 1 : i32
    %41 = arith.index_cast %c1_i32_16 : i32 to index
    %c0_17 = arith.constant 0 : index
    %c0_18 = arith.constant 0 : index
    %42 = vector.load %arg1[%41, %c0_17, %c0_18] : memref<2x4x128xf32, #tpu.memory_space<vmem>>, vector<1x4x128xf32>
    %43 = vector.shape_cast %42 : vector<1x4x128xf32> to vector<4x128xf32>
    %44 = arith.subf %43, %26 : vector<4x128xf32>
    %45 = arith.index_cast %c1_i32_16 : i32 to index
    %c0_19 = arith.constant 0 : index
    %c0_20 = arith.constant 0 : index
    %46 = vector.load %arg2[%45, %c0_19, %c0_20] : memref<2x4x128xf32, #tpu.memory_space<vmem>>, vector<1x4x128xf32>
    %47 = vector.shape_cast %46 : vector<1x4x128xf32> to vector<4x128xf32>
    %48 = arith.subf %47, %28 : vector<4x128xf32>
    %49 = arith.mulf %44, %44 : vector<4x128xf32>
    %50 = arith.mulf %48, %48 : vector<4x128xf32>
    %51 = arith.addf %49, %50 : vector<4x128xf32>
    %52 = arith.addf %40, %51 : vector<4x128xf32>
    %c2_i32_21 = arith.constant 2 : i32
    %cst_22 = arith.constant dense<0.000000e+00> : vector<128xf32>
    %53 = vector.multi_reduction <add>, %52, %cst_22 [0] : vector<4x128xf32> to vector<128xf32>
    %54 = vector.shape_cast %53 : vector<128xf32> to vector<1x128xf32>
    %cst_23 = arith.constant 0.142857149 : f32
    %55 = vector.broadcast %cst_23 : f32 to vector<1x128xf32>
    %56 = arith.mulf %54, %55 : vector<1x128xf32>
    %57 = math.sqrt %56 : vector<1x128xf32>
    %cst_24 = arith.constant 9.99999996E-13 : f32
    %58 = vector.broadcast %cst_24 : f32 to vector<1x128xf32>
    %59 = arith.addf %58, %57 : vector<1x128xf32>
    %60 = tpu.reciprocal %59 : vector<1x128xf32> -> vector<1x128xf32>
    %c0_25 = arith.constant 0 : index
    %c0_26 = arith.constant 0 : index
    %61 = vector.load %arg7[%c0_25, %c0_26] : memref<1x128xf32, #tpu.memory_space<vmem>>, vector<1x128xf32>
    %cst_27 = arith.constant 0.899999976 : f32
    %62 = vector.broadcast %cst_27 : f32 to vector<1x128xf32>
    %63 = arith.mulf %62, %61 : vector<1x128xf32>
    %cst_28 = arith.constant 1.000000e-01 : f32
    %64 = vector.broadcast %cst_28 : f32 to vector<1x128xf32>
    %65 = arith.mulf %64, %20 : vector<1x128xf32>
    %66 = arith.addf %63, %65 : vector<1x128xf32>
    %c0_29 = arith.constant 0 : index
    %c0_30 = arith.constant 0 : index
    %67 = vector.load %arg12[%c0_29, %c0_30] : memref<1x128xf32, #tpu.memory_space<vmem>>, vector<1x128xf32>
    tpu.vector_store %arg12[%c0_29, %c0_30], %66 {strides = array<i32>} : memref<1x128xf32, #tpu.memory_space<vmem>>, vector<1x128xf32>,
    %c0_31 = arith.constant 0 : index
    %c0_32 = arith.constant 0 : index
    %68 = vector.load %arg8[%c0_31, %c0_32] : memref<1x128xf32, #tpu.memory_space<vmem>>, vector<1x128xf32>
    %cst_33 = arith.constant 0.899999976 : f32
    %69 = vector.broadcast %cst_33 : f32 to vector<1x128xf32>
    %70 = arith.mulf %69, %68 : vector<1x128xf32>
    %cst_34 = arith.constant 1.000000e-01 : f32
    %71 = vector.broadcast %cst_34 : f32 to vector<1x128xf32>
    %72 = arith.mulf %71, %24 : vector<1x128xf32>
    %73 = arith.addf %70, %72 : vector<1x128xf32>
    %c0_35 = arith.constant 0 : index
    %c0_36 = arith.constant 0 : index
    %74 = vector.load %arg13[%c0_35, %c0_36] : memref<1x128xf32, #tpu.memory_space<vmem>>, vector<1x128xf32>
    tpu.vector_store %arg13[%c0_35, %c0_36], %73 {strides = array<i32>} : memref<1x128xf32, #tpu.memory_space<vmem>>, vector<1x128xf32>,
    %c0_37 = arith.constant 0 : index
    %c0_38 = arith.constant 0 : index
    %75 = vector.load %arg9[%c0_37, %c0_38] : memref<1x128xf32, #tpu.memory_space<vmem>>, vector<1x128xf32>
    %cst_39 = arith.constant 0.899999976 : f32
    %76 = vector.broadcast %cst_39 : f32 to vector<1x128xf32>
    %77 = arith.mulf %76, %75 : vector<1x128xf32>
    %cst_40 = arith.constant 1.000000e-01 : f32
    %78 = vector.broadcast %cst_40 : f32 to vector<1x128xf32>
    %79 = arith.mulf %78, %57 : vector<1x128xf32>
    %80 = arith.addf %77, %79 : vector<1x128xf32>
    %c0_41 = arith.constant 0 : index
    %c0_42 = arith.constant 0 : index
    %81 = vector.load %arg14[%c0_41, %c0_42] : memref<1x128xf32, #tpu.memory_space<vmem>>, vector<1x128xf32>
    tpu.vector_store %arg14[%c0_41, %c0_42], %80 {strides = array<i32>} : memref<1x128xf32, #tpu.memory_space<vmem>>, vector<1x128xf32>,
    %82 = vector.shape_cast %60 : vector<1x128xf32> to vector<1x128xf32>
    %83 = vector.broadcast %82 : vector<1x128xf32> to vector<4x128xf32>
    %c0_43 = arith.constant 0 : index
    %c0_44 = arith.constant 0 : index
    %84 = vector.load %arg3[%c0_43, %c0_44] : memref<4x128xf32, #tpu.memory_space<vmem>>, vector<4x128xf32>
    %c0_45 = arith.constant 0 : index
    %c0_46 = arith.constant 0 : index
    %85 = vector.load %arg4[%c0_45, %c0_46] : memref<4x128xf32, #tpu.memory_space<vmem>>, vector<4x128xf32>
    %86 = arith.mulf %84, %83 : vector<4x128xf32>
    %87 = arith.mulf %85, %83 : vector<4x128xf32>
    %c0_47 = arith.constant 0 : index
    %c0_48 = arith.constant 0 : index
    %88 = vector.load %arg5[%c0_47, %c0_48] : memref<4x128xf32, #tpu.memory_space<vmem>>, vector<4x128xf32>
    %89 = arith.mulf %26, %86 : vector<4x128xf32>
    %90 = arith.mulf %28, %87 : vector<4x128xf32>
    %91 = arith.subf %89, %90 : vector<4x128xf32>
    %92 = arith.subf %88, %91 : vector<4x128xf32>
    %c0_49 = arith.constant 0 : index
    %c0_50 = arith.constant 0 : index
    %93 = vector.load %arg6[%c0_49, %c0_50] : memref<4x128xf32, #tpu.memory_space<vmem>>, vector<4x128xf32>
    %94 = arith.mulf %26, %87 : vector<4x128xf32>
    %95 = arith.mulf %28, %86 : vector<4x128xf32>
    %96 = arith.addf %94, %95 : vector<4x128xf32>
    %97 = arith.subf %93, %96 : vector<4x128xf32>
    %c0_i32_51 = arith.constant 0 : i32
    %98 = arith.index_cast %c0_i32_51 : i32 to index
    %c0_52 = arith.constant 0 : index
    %c0_53 = arith.constant 0 : index
    %99 = vector.load %arg1[%98, %c0_52, %c0_53] : memref<2x4x128xf32, #tpu.memory_space<vmem>>, vector<1x4x128xf32>
    %100 = vector.shape_cast %99 : vector<1x4x128xf32> to vector<4x128xf32>
    %101 = arith.index_cast %c0_i32_51 : i32 to index
    %c0_54 = arith.constant 0 : index
    %c0_55 = arith.constant 0 : index
    %102 = vector.load %arg2[%101, %c0_54, %c0_55] : memref<2x4x128xf32, #tpu.memory_space<vmem>>, vector<1x4x128xf32>
    %103 = vector.shape_cast %102 : vector<1x4x128xf32> to vector<4x128xf32>
    %104 = arith.mulf %100, %86 : vector<4x128xf32>
    %105 = arith.mulf %103, %87 : vector<4x128xf32>
    %106 = arith.subf %104, %105 : vector<4x128xf32>
    %107 = arith.addf %106, %92 : vector<4x128xf32>
    %108 = arith.index_cast %c0_i32_51 : i32 to index
    %c0_56 = arith.constant 0 : index
    %c0_57 = arith.constant 0 : index
    %109 = vector.load %arg10[%108, %c0_56, %c0_57] : memref<2x4x128xf32, #tpu.memory_space<vmem>>, vector<1x4x128xf32>
    %110 = vector.shape_cast %109 : vector<1x4x128xf32> to vector<4x128xf32>
    %111 = vector.shape_cast %107 : vector<4x128xf32> to vector<1x4x128xf32>
    tpu.vector_store %arg10[%108, %c0_56, %c0_57], %111 {strides = array<i32>} : memref<2x4x128xf32, #tpu.memory_space<vmem>>, vector<1x4x128xf32>,
    %112 = arith.mulf %100, %87 : vector<4x128xf32>
    %113 = arith.mulf %103, %86 : vector<4x128xf32>
    %114 = arith.addf %112, %113 : vector<4x128xf32>
    %115 = arith.addf %114, %97 : vector<4x128xf32>
    %116 = arith.index_cast %c0_i32_51 : i32 to index
    %c0_58 = arith.constant 0 : index
    %c0_59 = arith.constant 0 : index
    %117 = vector.load %arg11[%116, %c0_58, %c0_59] : memref<2x4x128xf32, #tpu.memory_space<vmem>>, vector<1x4x128xf32>
    %118 = vector.shape_cast %117 : vector<1x4x128xf32> to vector<4x128xf32>
    %119 = vector.shape_cast %115 : vector<4x128xf32> to vector<1x4x128xf32>
    tpu.vector_store %arg11[%116, %c0_58, %c0_59], %119 {strides = array<i32>} : memref<2x4x128xf32, #tpu.memory_space<vmem>>, vector<1x4x128xf32>,
    %c1_i32_60 = arith.constant 1 : i32
    %120 = arith.index_cast %c1_i32_60 : i32 to index
    %c0_61 = arith.constant 0 : index
    %c0_62 = arith.constant 0 : index
    %121 = vector.load %arg1[%120, %c0_61, %c0_62] : memref<2x4x128xf32, #tpu.memory_space<vmem>>, vector<1x4x128xf32>
    %122 = vector.shape_cast %121 : vector<1x4x128xf32> to vector<4x128xf32>
    %123 = arith.index_cast %c1_i32_60 : i32 to index
    %c0_63 = arith.constant 0 : index
    %c0_64 = arith.constant 0 : index
    %124 = vector.load %arg2[%123, %c0_63, %c0_64] : memref<2x4x128xf32, #tpu.memory_space<vmem>>, vector<1x4x128xf32>
    %125 = vector.shape_cast %124 : vector<1x4x128xf32> to vector<4x128xf32>
    %126 = arith.mulf %122, %86 : vector<4x128xf32>
    %127 = arith.mulf %125, %87 : vector<4x128xf32>
    %128 = arith.subf %126, %127 : vector<4x128xf32>
    %129 = arith.addf %128, %92 : vector<4x128xf32>
    %130 = arith.index_cast %c1_i32_60 : i32 to index
    %c0_65 = arith.constant 0 : index
    %c0_66 = arith.constant 0 : index
    %131 = vector.load %arg10[%130, %c0_65, %c0_66] : memref<2x4x128xf32, #tpu.memory_space<vmem>>, vector<1x4x128xf32>
    %132 = vector.shape_cast %131 : vector<1x4x128xf32> to vector<4x128xf32>
    %133 = vector.shape_cast %129 : vector<4x128xf32> to vector<1x4x128xf32>
    tpu.vector_store %arg10[%130, %c0_65, %c0_66], %133 {strides = array<i32>} : memref<2x4x128xf32, #tpu.memory_space<vmem>>, vector<1x4x128xf32>,
    %134 = arith.mulf %122, %87 : vector<4x128xf32>
    %135 = arith.mulf %125, %86 : vector<4x128xf32>
    %136 = arith.addf %134, %135 : vector<4x128xf32>
    %137 = arith.addf %136, %97 : vector<4x128xf32>
    %138 = arith.index_cast %c1_i32_60 : i32 to index
    %c0_67 = arith.constant 0 : index
    %c0_68 = arith.constant 0 : index
    %139 = vector.load %arg11[%138, %c0_67, %c0_68] : memref<2x4x128xf32, #tpu.memory_space<vmem>>, vector<1x4x128xf32>
    %140 = vector.shape_cast %139 : vector<1x4x128xf32> to vector<4x128xf32>
    %141 = vector.shape_cast %137 : vector<4x128xf32> to vector<1x4x128xf32>
    tpu.vector_store %arg11[%138, %c0_67, %c0_68], %141 {strides = array<i32>} : memref<2x4x128xf32, #tpu.memory_space<vmem>>, vector<1x4x128xf32>,
    %c2_i32_69 = arith.constant 2 : i32
    return
  }
  func.func @transform_0(%arg0: i32) -> (i32, i32, i32) {
    %c0_i32 = arith.constant 0 : i32
    %c0_i32_0 = arith.constant 0 : i32
    %c0_i32_1 = arith.constant 0 : i32
    return %c0_i32, %c0_i32_0, %arg0 : i32, i32, i32
  }
  func.func @transform_1(%arg0: i32) -> (i32, i32, i32) {
    %c0_i32 = arith.constant 0 : i32
    %c0_i32_0 = arith.constant 0 : i32
    %c0_i32_1 = arith.constant 0 : i32
    return %c0_i32, %c0_i32_0, %arg0 : i32, i32, i32
  }
  func.func @transform_2(%arg0: i32) -> (i32, i32) {
    %c0_i32 = arith.constant 0 : i32
    %c0_i32_0 = arith.constant 0 : i32
    return %c0_i32, %arg0 : i32, i32
  }
  func.func @transform_3(%arg0: i32) -> (i32, i32) {
    %c0_i32 = arith.constant 0 : i32
    %c0_i32_0 = arith.constant 0 : i32
    return %c0_i32, %arg0 : i32, i32
  }
  func.func @transform_4(%arg0: i32) -> (i32, i32) {
    %c0_i32 = arith.constant 0 : i32
    %c0_i32_0 = arith.constant 0 : i32
    return %c0_i32, %arg0 : i32, i32
  }
  func.func @transform_5(%arg0: i32) -> (i32, i32) {
    %c0_i32 = arith.constant 0 : i32
    %c0_i32_0 = arith.constant 0 : i32
    return %c0_i32, %arg0 : i32, i32
  }
  func.func @transform_6(%arg0: i32) -> (i32, i32) {
    %c0_i32 = arith.constant 0 : i32
    %c0_i32_0 = arith.constant 0 : i32
    return %c0_i32, %arg0 : i32, i32
  }
  func.func @transform_7(%arg0: i32) -> (i32, i32) {
    %c0_i32 = arith.constant 0 : i32
    %c0_i32_0 = arith.constant 0 : i32
    return %c0_i32, %arg0 : i32, i32
  }
  func.func @transform_8(%arg0: i32) -> (i32, i32) {
    %c0_i32 = arith.constant 0 : i32
    %c0_i32_0 = arith.constant 0 : i32
    return %c0_i32, %arg0 : i32, i32
  }
  func.func @transform_9(%arg0: i32) -> (i32, i32, i32) {
    %c0_i32 = arith.constant 0 : i32
    %c0_i32_0 = arith.constant 0 : i32
    %c0_i32_1 = arith.constant 0 : i32
    return %c0_i32, %c0_i32_0, %arg0 : i32, i32, i32
  }
  func.func @transform_10(%arg0: i32) -> (i32, i32, i32) {
    %c0_i32 = arith.constant 0 : i32
    %c0_i32_0 = arith.constant 0 : i32
    %c0_i32_1 = arith.constant 0 : i32
    return %c0_i32, %c0_i32_0, %arg0 : i32, i32, i32
  }
  func.func @transform_11(%arg0: i32) -> (i32, i32) {
    %c0_i32 = arith.constant 0 : i32
    %c0_i32_0 = arith.constant 0 : i32
    return %c0_i32, %arg0 : i32, i32
  }
  func.func @transform_12(%arg0: i32) -> (i32, i32) {
    %c0_i32 = arith.constant 0 : i32
    %c0_i32_0 = arith.constant 0 : i32
    return %c0_i32, %arg0 : i32, i32
  }
  func.func @transform_13(%arg0: i32) -> (i32, i32) {
    %c0_i32 = arith.constant 0 : i32
    %c0_i32_0 = arith.constant 0 : i32
    return %c0_i32, %arg0 : i32, i32
  }
}

</mosaic_0001>

<bundles_post_ra>
// kernel: tpu_custom_call.1
= control target key start
LH: loop header
LB: loop body
LE: loop exit
PB: predicated region body
PF: predicated region fallthrough
CT: control target
= control target key end

     0   :  { %19 = vsyncpa [#allocation3], 0  ;;  %s800_s0 = inlined_call_operand.vmem [shape: f32[2,4,16], index: 0, kind: input, shape index: {}]   ;;  %s801_s1 = inlined_call_operand.vmem [shape: f32[2,4,16], index: 1, kind: input, shape index: {}]   ;;  %s802_s2 = inlined_call_operand.vmem [shape: f32[4,16], index: 2, kind: input, shape index: {}]   ;;  %s803_s3 = inlined_call_operand.vmem [shape: f32[4,16], index: 3, kind: input, shape index: {}]   ;;  %s804_s4 = inlined_call_operand.hbm [shape: f32[4,16], index: 4, kind: input, shape index: {}]   ;;  %s805_s5 = inlined_call_operand.hbm [shape: f32[4,16], index: 5, kind: input, shape index: {}]   ;;  %s806_s6 = inlined_call_operand.hbm [shape: f32[1,16], index: 6, kind: input, shape index: {}, may-alias: {6,11}]   ;;  %s807_s7 = inlined_call_operand.hbm [shape: f32[1,16], index: 7, kind: input, shape index: {}, may-alias: {7,12}]   ;;  %s808_s8 = inlined_call_operand.hbm [shape: f32[1,16], index: 8, kind: input, shape index: {}, may-alias: {8,13}]   ;;  %s809_s9 = inlined_call_operand.hbm [shape: f32[2,4,16], index: 9, kind: output, shape index: {0}]   ;;  %s810_s10 = inlined_call_operand.hbm [shape: f32[2,4,16], index: 10, kind: output, shape index: {1}]   ;;  %s811_s11 = inlined_call_operand.hbm [shape: f32[1,16], index: 11, kind: output, shape index: {2}, may-alias: {6,11}]   ;;  %s812_s12 = inlined_call_operand.hbm [shape: f32[1,16], index: 12, kind: output, shape index: {3}, may-alias: {7,12}]   ;;  %s813_s13 = inlined_call_operand.hbm [shape: f32[1,16], index: 13, kind: output, shape index: {4}, may-alias: {8,13}]  }
   0x1   :  { %20 = vsyncpa [#allocation6], 0 }
   0x2   :  { %21 = vsyncpa [#allocation9], 0 }
   0x3   :  { %22 = vsyncpa [#allocation4], 0 }
   0x4   :  { %23 = vsyncpa [#allocation13], 0 }
   0x5   :  { %24 = vsyncpa [#allocation16], 0  ;;  %s536_s25 = smov [#allocation5]   ;;  %s537_s27 = smov [#allocation8]  }
   0x6   :  { %s49_s26 = sshll.u32 %s536_s25, 4  ;;  %s69_s28 = sshll.u32 %s537_s27, 4  ;;  %s50_s26 = int_to_ptr.vmem [resolvable:$true] %s49_s26  ;;  %s70_s28 = int_to_ptr.vmem [resolvable:$true] %s69_s28 }
   0x7   :  { %s304_s14 = scalar_lea.hbm %s805_s5, 64 }
   0x8   :  { %p305_p0 = scmp.ne.s32.totalorder %s805_s5, %s304_s14  ;;  %p308_p1 = scmp.lt.u32.totalorder %s304_s14, %s805_s5 }
   0xa   :  { %p310_p2 = pnand %p308_p1, %p305_p0 }
   0xc   :  { %313 = shalt.err (!%p310_p2)
}
   0xd   :  { %s314_s19 = scalar_lea.vmem %s50_s26, 64  ;;  %p319_p4 = scmp.lt.s32.totalorder %s50_s26, %s50_s26 }
   0xe   :  { %p315_p3 = scmp.ne.s32.totalorder %s50_s26, %s314_s19  ;;  %p320_p5 = scmp.lt.s32.totalorder %s314_s19, %s314_s19 }
  0x10   :  { %p321_p6 = por %p320_p5, %p319_p4 }
  0x12   :  { %p322_p7 = pnand %p321_p6, %p315_p3 }
  0x14   :  { %325 = shalt.err (!%p322_p7)
}
  0x15   :  { %52 = dma.hbm_to_vmem [thread:$0]  %s805_s5, 64, %s50_s26, [#allocation6]  }
  0x16   :  { %s326_s24 = scalar_lea.hbm %s807_s7, 16 }
  0x17   :  { %p327_p8 = scmp.ne.s32.totalorder %s807_s7, %s326_s24  ;;  %p330_p9 = scmp.lt.u32.totalorder %s326_s24, %s807_s7 }
  0x19   :  { %p332_p10 = pnand %p330_p9, %p327_p8 }
  0x1b   :  { %335 = shalt.err (!%p332_p10)
}
  0x1c   :  { %s336_s14 = scalar_lea.vmem %s70_s28, 16  ;;  %s340_s15 = scalar_lea.vmem %s70_s28, 32 }
  0x1d   :  { %p337_p11 = scmp.ne.s32.totalorder %s70_s28, %s336_s14  ;;  %p341_p12 = scmp.lt.s32.totalorder %s70_s28, %s70_s28 }
  0x1e   :  { %p342_p13 = scmp.lt.s32.totalorder %s340_s15, %s336_s14 }
  0x20   :  { %p343_p0 = por %p342_p13, %p341_p12 }
  0x22   :  { %p344_p1 = pnand %p343_p0, %p337_p11 }
  0x24   :  { %347 = shalt.err (!%p344_p1)
}
  0x25   :  { %72 = dma.hbm_to_vmem [thread:$0]  %s807_s7, 16, %s70_s28, [#allocation9]  }
  0x26   :  { %s538_s16 = smov [#allocation2]   ;;  %s539_s18 = smov [#allocation7]  }
  0x27   :  { %s39_s17 = sshll.u32 %s538_s16, 4  ;;  %s59_s19 = sshll.u32 %s539_s18, 4  ;;  %s40_s17 = int_to_ptr.vmem [resolvable:$true] %s39_s17  ;;  %s60_s19 = int_to_ptr.vmem [resolvable:$true] %s59_s19 }
  0x28   :  { %s348_s22 = scalar_lea.hbm %s804_s4, 64 }
  0x29   :  { %p349_p2 = scmp.ne.s32.totalorder %s804_s4, %s348_s22  ;;  %p352_p3 = scmp.lt.u32.totalorder %s348_s22, %s804_s4 }
  0x2b   :  { %p354_p4 = pnand %p352_p3, %p349_p2 }
  0x2d   :  { %357 = shalt.err (!%p354_p4)
}
  0x2e   :  { %s358_s7 = scalar_lea.vmem %s40_s17, 64  ;;  %p363_p6 = scmp.lt.s32.totalorder %s40_s17, %s40_s17 }
  0x2f   :  { %p359_p5 = scmp.ne.s32.totalorder %s40_s17, %s358_s7  ;;  %p364_p7 = scmp.lt.s32.totalorder %s358_s7, %s358_s7 }
  0x31   :  { %p365_p8 = por %p364_p7, %p363_p6 }
  0x33   :  { %p366_p9 = pnand %p365_p8, %p359_p5 }
  0x35   :  { %369 = shalt.err (!%p366_p9)
}
  0x36   :  { %42 = dma.hbm_to_vmem [thread:$0]  %s804_s4, 64, %s40_s17, [#allocation3]  }
  0x37   :  { %s370_s15 = scalar_lea.hbm %s806_s6, 16 }
  0x38   :  { %p371_p10 = scmp.ne.s32.totalorder %s806_s6, %s370_s15  ;;  %p374_p11 = scmp.lt.u32.totalorder %s370_s15, %s806_s6 }
  0x3a   :  { %p376_p12 = pnand %p374_p11, %p371_p10 }
  0x3c   :  { %379 = shalt.err (!%p376_p12)
}
  0x3d   :  { %s380_s20 = scalar_lea.vmem %s60_s19, 16  ;;  %s384_s21 = scalar_lea.vmem %s60_s19, 32 }
  0x3e   :  { %p381_p13 = scmp.ne.s32.totalorder %s60_s19, %s380_s20  ;;  %p385_p0 = scmp.lt.s32.totalorder %s60_s19, %s60_s19 }
  0x3f   :  { %p386_p1 = scmp.lt.s32.totalorder %s384_s21, %s380_s20 }
  0x41   :  { %p387_p2 = por %p386_p1, %p385_p0 }
  0x43   :  { %p388_p3 = pnand %p387_p2, %p381_p13 }
  0x45   :  { %391 = shalt.err (!%p388_p3)
}
  0x46   :  { %62 = dma.hbm_to_vmem [thread:$0]  %s806_s6, 16, %s60_s19, [#allocation6]  }
  0x47   :  { %s540_s22 = smov [#allocation10]   ;;  %s392_s27 = scalar_lea.hbm %s808_s8, 16 }
  0x48   :  { %s79_s23 = sshll.u32 %s540_s22, 4  ;;  %p393_p4 = scmp.ne.s32.totalorder %s808_s8, %s392_s27  ;;  %s80_s23 = int_to_ptr.vmem [resolvable:$true] %s79_s23 }
  0x49   :  { %p396_p5 = scmp.lt.u32.totalorder %s392_s27, %s808_s8 }
  0x4b   :  { %p398_p6 = pnand %p396_p5, %p393_p4 }
  0x4d   :  { %401 = shalt.err (!%p398_p6)
}
  0x4e   :  { %s402_s14 = scalar_lea.vmem %s80_s23, 16  ;;  %s406_s6 = scalar_lea.vmem %s80_s23, 32 }
  0x4f   :  { %p403_p7 = scmp.ne.s32.totalorder %s80_s23, %s402_s14  ;;  %p407_p8 = scmp.lt.s32.totalorder %s80_s23, %s80_s23 }
  0x50   :  { %p408_p9 = scmp.lt.s32.totalorder %s406_s6, %s402_s14 }
  0x52   :  { %p409_p10 = por %p408_p9, %p407_p8 }
  0x54   :  { %p410_p11 = pnand %p409_p10, %p403_p7 }
  0x56   :  { %413 = shalt.err (!%p410_p11)
}
  0x57   :  { %82 = dma.hbm_to_vmem [thread:$0]  %s808_s8, 16, %s80_s23, [#allocation9]  }
  0x58   :  { %524 = dma.done.wait [#allocation3], 64  }
  0x59   :  { %525 = vsyncadd [#allocation3], 4294967232 }
  0x5a   :  { %526 = dma.done.wait [#allocation6], 80  }
  0x5b   :  { %527 = vsyncadd [#allocation6], 4294967216 }
  0x5c   :  { %528 = dma.done.wait [#allocation9], 32  }
  0x5d   :  { %529 = vsyncadd [#allocation9], 4294967264  ;;  %v100_v0 = vld [vmem:[%s801_s1] sm:$0xf]  ;;  %v285_v1 = vld [vmem:[%s801_s1 + $0x4] sm:$0xf] }
  0x5e   :  { %vm108_vm0 = vcmask 1043456   ;;  %v107_v2 = vadd.f32 %v285_v1, %v100_v0  ;;  %v98_v3 = vld [vmem:[%s800_s0] sm:$0xf]  ;;  %v284_v4 = vld [vmem:[%s800_s0 + $0x4] sm:$0xf]  ;;  %s541_s17 = smov [#allocation15]  }
  0x5f   :  { %v104_v5 = vadd.f32 %v284_v4, %v98_v3  ;;  %v159_v17 = vld [vmem:[#allocation8] sm:$0x1]  ;;  %v154_v20 = vld [vmem:[#allocation7] sm:$0x1]  ;;  %s249_s22 = sshll.u32 %s541_s17, 4  ;;  %s250_s22 = int_to_ptr.vmem [resolvable:$true] %s249_s22 }
  0x60   :  { %v117_v6 = vsel %vm108_vm0, %v107_v2, 0.0  ;;  %v160_v23 = vmul.f32 0.9, %v159_v17  ;;  %v155_v25 = vmul.f32 0.9, %v154_v20  ;;  %s414_s23 = scalar_lea.vmem %s250_s22, 16  ;;  %p419_p13 = scmp.lt.s32.totalorder %s250_s22, %s250_s22 }
  0x61   :  { %v118_v7 = vrot.slane %v117_v6, 4  ;;  %v109_v8 = vsel %vm108_vm0, %v104_v5, 0.0  ;;  %p415_p12 = scmp.ne.s32.totalorder %s250_s22, %s414_s23  ;;  %s418_s24 = scalar_lea.vmem %s250_s22, 32 }
  0x62   :  { %v110_v9 = vrot.slane %v109_v8, 4  ;;  %p420_p0 = scmp.lt.s32.totalorder %s418_s24, %s414_s23 }
  0x63   :  { %v119_v10 = vadd.f32 %v118_v7, %v117_v6 }
  0x64   :  { %v111_v11 = vadd.f32 %v110_v9, %v109_v8  ;;  %p421_p1 = por %p420_p0, %p419_p13 }
  0x65   :  { %v120_v12 = vrot.slane %v119_v10, 2 }
  0x66   :  { %v112_v13 = vrot.slane %v111_v11, 2  ;;  %p422_p2 = pnand %p421_p1, %p415_p12 }
  0x67   :  { %v121_v14 = vadd.f32 %v120_v12, %v119_v10 }
  0x68   :  { %v113_v15 = vadd.f32 %v112_v13, %v111_v11 }
  0x69   :  { %v122_v16 = vrot.slane %v121_v14, 1 }
  0x6a   :  { %v114_v18 = vrot.slane %v113_v15, 1 }
  0x6b   :  { %v123_v19 = vadd.f32 %v122_v16, %v121_v14 }
  0x6c   :  { %v115_v21 = vadd.f32 %v114_v18, %v113_v15 }
  0x6d   :  { %v692_v22 = vmul.f32 0.125, %v123_v19 }
  0x6e   :  { %v694_v24 = vmul.f32 0.125, %v115_v21 }
  0x6f   :  { %v126_v26 = vsub.f32 %v100_v0, %v692_v22  ;;  %v132_v27 = vsub.f32 %v285_v1, %v692_v22  ;;  %v161_v28 = vmul.f32 0.1, %v692_v22 }
  0x70   :  { %v125_v29 = vsub.f32 %v98_v3, %v694_v24  ;;  %v131_v30 = vsub.f32 %v284_v4, %v694_v24  ;;  %v156_v31 = vmul.f32 0.1, %v694_v24 }
  0x71   :  { %v128_v32 = vmul.f32 %v126_v26, %v126_v26  ;;  %v134_v33 = vmul.f32 %v132_v27, %v132_v27  ;;  %v162_v34 = vadd.f32 %v161_v28, %v160_v23 }
  0x72   :  { %v127_v35 = vmul.f32 %v125_v29, %v125_v29  ;;  %v133_v36 = vmul.f32 %v131_v30, %v131_v30  ;;  %v157_v37 = vadd.f32 %v156_v31, %v155_v25 }
  0x73   :  { %163 = vst [vmem:[#allocation15] sm:$0x1] %v162_v34 }
  0x74   :  { %v129_v38 = vadd.f32 %v128_v32, %v127_v35  ;;  %v135_v39 = vadd.f32 %v134_v33, %v133_v36  ;;  %158 = vst [vmem:[#allocation14] sm:$0x1] %v157_v37 }
  0x75   :  { %425 = shalt.err (!%p422_p2)
}
  0x76   :  { %s426_s7 = scalar_lea.hbm %s812_s12, 16 }
  0x77   :  { %p427_p3 = scmp.ne.s32.totalorder %s812_s12, %s426_s7  ;;  %p430_p4 = scmp.lt.u32.totalorder %s426_s7, %s812_s12 }
  0x79   :  { %p432_p5 = pnand %p430_p4, %p427_p3 }
  0x7b   :  { %435 = shalt.err (!%p432_p5)
}
  0x7c   :  { %252 = dma.vmem_to_hbm [thread:$0]  %s250_s22, 16, %s812_s12, [#allocation16]   ;;  %v136_v40 = vadd.f32 %v135_v39, %v129_v38  ;;  %v164_v51 = vld [vmem:[#allocation10] sm:$0x1] }
  0x7d   :  { %v165_v54 = vmul.f32 0.9, %v164_v51  ;;  %s542_s12 = smov [#allocation17]  }
  0x7e   :  { %v137_v41 = vsel %vm108_vm0, %v136_v40, 0.0  ;;  %s259_s15 = sshll.u32 %s542_s12, 4  ;;  %s260_s15 = int_to_ptr.vmem [resolvable:$true] %s259_s15 }
  0x7f   :  { %v138_v42 = vrot.slane %v137_v41, 4  ;;  %s436_s5 = scalar_lea.vmem %s260_s15, 16  ;;  %s440_s26 = scalar_lea.vmem %s260_s15, 32 }
  0x80   :  { %p437_p6 = scmp.ne.s32.totalorder %s260_s15, %s436_s5  ;;  %p441_p7 = scmp.lt.s32.totalorder %s260_s15, %s260_s15 }
  0x81   :  { %v139_v43 = vadd.f32 %v138_v42, %v137_v41  ;;  %p442_p8 = scmp.lt.s32.totalorder %s440_s26, %s436_s5 }
  0x83   :  { %v140_v44 = vrot.slane %v139_v43, 2  ;;  %p443_p9 = por %p442_p8, %p441_p7 }
  0x85   :  { %v141_v45 = vadd.f32 %v140_v44, %v139_v43  ;;  %p444_p10 = pnand %p443_p9, %p437_p6 }
  0x87   :  { %v142_v46 = vrot.slane %v141_v45, 1 }
  0x89   :  { %v143_v47 = vadd.f32 %v142_v46, %v141_v45 }
  0x8b   :  { %v144_v48 = vmul.f32 0.14285715, %v143_v47 }
  0x8d   :  { %300 = vrsqrt.f32 %v144_v48  ;;  %vm147_vm1 = vcmp.eq.f32.partialorder %v144_v48, inf  ;;  %v150_v50 = vand.u32 2147483648, %v144_v48  ;;  %vm149_vm2 = vcmp.eq.f32.partialorder %v144_v48, 0.0 }
  0x97   :  { %v301_v49 = vpop.eup %300 }
  0x98   :  { %v146_v52 = vmul.f32 %v301_v49, %v144_v48 }
  0x9a   :  { %v148_v53 = vsel %vm147_vm1, %v144_v48, %v146_v52 }
  0x9b   :  { %v151_v55 = vsel %vm149_vm2, %v150_v50, %v148_v53 }
  0x9c   :  { %v152_v56 = vadd.f32 1e-12, %v151_v55  ;;  %v166_v57 = vmul.f32 0.1, %v151_v55 }
  0x9e   :  { %302 = vrcp.f32 %v152_v56  ;;  %v167_v58 = vadd.f32 %v166_v57, %v165_v54 }
  0xa0   :  { %168 = vst [vmem:[#allocation17] sm:$0x1] %v167_v58 }
  0xa1   :  { %447 = shalt.err (!%p444_p10)
}
  0xa2   :  { %s448_s20 = scalar_lea.hbm %s813_s13, 16 }
  0xa3   :  { %p449_p11 = scmp.ne.s32.totalorder %s813_s13, %s448_s20  ;;  %p452_p12 = scmp.lt.u32.totalorder %s448_s20, %s813_s13 }
  0xa5   :  { %p454_p13 = pnand %p452_p12, %p449_p11 }
  0xa7   :  { %457 = shalt.err (!%p454_p13)
}
  0xa8   :  { %262 = dma.vmem_to_hbm [thread:$0]  %s260_s15, 16, %s813_s13, [#allocation16]   ;;  %v169_v59 = vld [vmem:[%s802_s2] sm:$0xf]  ;;  %v303_v61 = vpop.eup %302  ;;  %v286_v2 = vld [vmem:[%s800_s0 + $0x4] sm:$0xf] }
  0xa9   :  { %v170_v60 = vld [vmem:[%s803_s3] sm:$0xf]  ;;  %v171_v0 = vmul.f32 %v303_v61, %v169_v59  ;;  %v287_v3 = vld [vmem:[%s801_s1 + $0x4] sm:$0xf]  ;;  %s544_s3 = smov [#allocation11]   ;;  %s545_s15 = smov [#allocation14]  }
  0xaa   :  { %v183_v62 = vld [vmem:[%s800_s0] sm:$0xf]  ;;  %v172_v1 = vmul.f32 %v303_v61, %v170_v60  ;;  %v178_v8 = vld [vmem:[#allocation5] sm:$0xf]  ;;  %s543_s0 = smov [#allocation12]   ;;  %s214_s12 = sshll.u32 %s544_s3, 4  ;;  %s749_s12 = int_to_ptr.vmem [resolvable:$true] %s214_s12 }
  0xab   :  { %v184_v63 = vld [vmem:[%s801_s1] sm:$0xf]  ;;  %v180_v5 = vmul.f32 %v171_v0, %v692_v22  ;;  %v204_v10 = vmul.f32 %v287_v3, %v171_v0  ;;  %v174_v11 = vmul.f32 %v171_v0, %v694_v24  ;;  %v185_v16 = vmul.f32 %v183_v62, %v171_v0  ;;  %s226_s1 = sshll.u32 %s543_s0, 4  ;;  %s239_s5 = sshll.u32 %s545_s15, 4  ;;  %s227_s1 = int_to_ptr.vmem [resolvable:$true] %s226_s1  ;;  %s751_s5 = int_to_ptr.vmem [resolvable:$true] %s239_s5 }
  0xac   :  { %v179_v4 = vmul.f32 %v172_v1, %v694_v24  ;;  %v190_v6 = vmul.f32 %v183_v62, %v172_v1  ;;  %v191_v7 = vmul.f32 %v184_v63, %v171_v0  ;;  %v203_v9 = vmul.f32 %v286_v2, %v172_v1  ;;  %v173_v15 = vld [vmem:[#allocation2] sm:$0xf]  ;;  %s458_s26 = scalar_lea.vmem %s227_s1, 128  ;;  %p463_p1 = scmp.lt.s32.totalorder %s227_s1, %s227_s1 }
  0xad   :  { %v175_v12 = vmul.f32 %v172_v1, %v692_v22  ;;  %v186_v17 = vmul.f32 %v184_v63, %v172_v1  ;;  %v197_v20 = vmul.f32 %v286_v2, %v171_v0  ;;  %v198_v21 = vmul.f32 %v287_v3, %v172_v1  ;;  %p459_p0 = scmp.ne.s32.totalorder %s227_s1, %s458_s26  ;;  %p464_p2 = scmp.lt.s32.totalorder %s458_s26, %s458_s26 }
  0xae   :  { %v181_v13 = vadd.f32 %v180_v5, %v179_v4  ;;  %v192_v14 = vadd.f32 %v191_v7, %v190_v6  ;;  %v205_v18 = vadd.f32 %v204_v10, %v203_v9 }
  0xaf   :  { %v176_v19 = vsub.f32 %v174_v11, %v175_v12  ;;  %v187_v25 = vsub.f32 %v185_v16, %v186_v17  ;;  %v199_v27 = vsub.f32 %v197_v20, %v198_v21  ;;  %p465_p3 = por %p464_p2, %p463_p1 }
  0xb0   :  { %v182_v23 = vsub.f32 %v178_v8, %v181_v13 }
  0xb1   :  { %v177_v26 = vsub.f32 %v173_v15, %v176_v19  ;;  %p466_p4 = pnand %p465_p3, %p459_p0 }
  0xb2   :  { %v193_v22 = vadd.f32 %v192_v14, %v182_v23  ;;  %v206_v24 = vadd.f32 %v205_v18, %v182_v23 }
  0xb3   :  { %v188_v28 = vadd.f32 %v187_v25, %v177_v26  ;;  %v200_v29 = vadd.f32 %v199_v27, %v177_v26 }
  0xb4   :  { %194 = vst [vmem:[#allocation12] sm:$0xf] %v193_v22  ;;  %208 = vst [vmem:[#allocation12 + $0x4] sm:$0xf] %v206_v24 }
  0xb5   :  { %189 = vst [vmem:[#allocation11] sm:$0xf] %v188_v28  ;;  %202 = vst [vmem:[#allocation11 + $0x4] sm:$0xf] %v200_v29 }
  0xb6   :  { %469 = shalt.err (!%p466_p4)
}
  0xb7   :  { %s470_s20 = scalar_lea.hbm %s810_s10, 128 }
  0xb8   :  { %p471_p5 = scmp.ne.s32.totalorder %s810_s10, %s470_s20  ;;  %p474_p6 = scmp.lt.u32.totalorder %s470_s20, %s810_s10 }
  0xba   :  { %p476_p7 = pnand %p474_p6, %p471_p5 }
  0xbc   :  { %479 = shalt.err (!%p476_p7)
}
  0xbd   :  { %s546_s22 = smov 64   ;;  %s547_s23 = smov 4  }
  0xbe   :  { %232 = dma.vmem_to_hbm [thread:$0]  %s227_s1, 128, %s810_s10, [#allocation13], %s546_s22, %s546_s22, %s547_s23  }
  0xbf   :  { %s480_s27 = scalar_lea.vmem %s749_s12, 128  ;;  %p485_p9 = scmp.lt.s32.totalorder %s749_s12, %s749_s12 }
  0xc0   :  { %p481_p8 = scmp.ne.s32.totalorder %s749_s12, %s480_s27  ;;  %p486_p10 = scmp.lt.s32.totalorder %s480_s27, %s480_s27 }
  0xc2   :  { %p487_p11 = por %p486_p10, %p485_p9 }
  0xc4   :  { %p488_p12 = pnand %p487_p11, %p481_p8 }
  0xc6   :  { %491 = shalt.err (!%p488_p12)
}
  0xc7   :  { %s492_s29 = scalar_lea.hbm %s809_s9, 128 }
  0xc8   :  { %p493_p13 = scmp.ne.s32.totalorder %s809_s9, %s492_s29  ;;  %p496_p0 = scmp.lt.u32.totalorder %s492_s29, %s809_s9 }
  0xca   :  { %p498_p1 = pnand %p496_p0, %p493_p13 }
  0xcc   :  { %501 = shalt.err (!%p498_p1)
}
  0xcd   :  { %220 = dma.vmem_to_hbm [thread:$0]  %s749_s12, 128, %s809_s9, [#allocation4], %s546_s22, %s546_s22, %s547_s23  }
  0xce   :  { %s502_s19 = scalar_lea.vmem %s751_s5, 16  ;;  %s506_s0 = scalar_lea.vmem %s751_s5, 32 }
  0xcf   :  { %p503_p2 = scmp.ne.s32.totalorder %s751_s5, %s502_s19  ;;  %p507_p3 = scmp.lt.s32.totalorder %s751_s5, %s751_s5 }
  0xd0   :  { %p508_p4 = scmp.lt.s32.totalorder %s506_s0, %s502_s19 }
  0xd2   :  { %p509_p5 = por %p508_p4, %p507_p3 }
  0xd4   :  { %p510_p6 = pnand %p509_p5, %p503_p2 }
  0xd6   :  { %513 = shalt.err (!%p510_p6)
}
  0xd7   :  { %s514_s15 = scalar_lea.hbm %s811_s11, 16 }
  0xd8   :  { %p515_p7 = scmp.ne.s32.totalorder %s811_s11, %s514_s15  ;;  %p518_p8 = scmp.lt.u32.totalorder %s514_s15, %s811_s11 }
  0xda   :  { %p520_p9 = pnand %p518_p8, %p515_p7 }
  0xdc   :  { %523 = shalt.err (!%p520_p9)
}
  0xdd   :  { %242 = dma.vmem_to_hbm [thread:$0]  %s751_s5, 16, %s811_s11, [#allocation13]  }
  0xde   :  { %530 = dma.done.wait [#allocation4], 128  }
  0xdf   :  { %531 = vsyncadd [#allocation4], 4294967168 }
  0xe0   :  { %532 = dma.done.wait [#allocation13], 144  }
  0xe1   :  { %533 = vsyncadd [#allocation13], 4294967152 }
  0xe2   :  { %534 = dma.done.wait [#allocation16], 32  }
  0xe3   :  { %535 = vsyncadd [#allocation16], 4294967264 }
  0xe4   :  { %278 = vsyncpa [#allocation3], 1 }
  0xe5   :  { %279 = vsyncpa [#allocation6], 1 }
  0xe6   :  { %280 = vsyncpa [#allocation9], 1 }
  0xe7   :  { %281 = vsyncpa [#allocation4], 1 }
  0xe8   :  { %282 = vsyncpa [#allocation13], 1 }
  0xe9   :  { %283 = vsyncpa [#allocation16], 1 }

</bundles_post_ra>
